<compile_context>
chip_gen: v6e
topology: v6e:2x2x1
jax: 0.10.0
libtpu: 0.0.40
codegen_flags: <defaults>
</compile_context>

<pallas_src>
import functools

import jax
import jax.numpy as jnp
from jax.experimental import pallas as pl
from jax.experimental.pallas import tpu as pltpu


def _gelu_tanh(x):
    # Megatron / oslo fused_bias_gelu approximation (f32 math):
    # x * 0.5 * (1 + tanh(0.79788456 * x * (1 + 0.044715 * x^2)))
    return x * 0.5 * (1.0 + jnp.tanh(0.7978845608028654 * x * (1.0 + 0.044715 * x * x)))


def ffn_kernel(x_ref, w1_ref, b1_ref, w2_ref, b2_ref, o_ref, *scratch, mxu_dtype):
    """One (tm, D) row-tile of the FFN.

    x_ref  : (tm, D)              activations (mxu_dtype), pipelined row tile
    w1_ref : (n_chunks, D, th)    lin1 weight, hidden dim pre-chunked (mxu_dtype), VMEM resident
    b1_ref : (n_chunks, 1, th)    lin1 bias (f32), VMEM resident
    w2_ref : (n_chunks, th, D)    lin2 weight, hidden dim pre-chunked (mxu_dtype), VMEM resident
    b2_ref : (1, D)               lin2 bias (f32), VMEM resident
    o_ref  : (tm, D)              output (original input dtype)
    scratch: ((tm, D) f32 VMEM accumulator)  -- only present when n_chunks > 1
    """
    n_chunks = w1_ref.shape[0]

    def chunk(c):
        # Per-chunk ref read (keeps vreg live ranges short at large tm).
        h = jnp.dot(x_ref[...], w1_ref[c], preferred_element_type=jnp.float32)  # (tm, th) f32
        g = _gelu_tanh(h + b1_ref[c])                                            # fused_bias_gelu
        return jnp.dot(g.astype(mxu_dtype), w2_ref[c],
                       preferred_element_type=jnp.float32)                       # (tm, D) f32

    # FusedBiasDropout in eval mode: y + bias (dropout is identity) -> fold b2 into init.
    if n_chunks == 1:
        o_ref[...] = (chunk(0) + b2_ref[...]).astype(o_ref.dtype)
    else:
        acc_ref = scratch[0]
        # Static unroll: trace-time constant trip count gives the scheduler full
        # visibility to overlap GELU/VPU work with neighbouring chunks' MXU pushes.
        acc_ref[...] = chunk(0) + b2_ref[...]
        for c in range(1, n_chunks - 1):
            acc_ref[...] += chunk(c)
        o_ref[...] = (acc_ref[...] + chunk(n_chunks - 1)).astype(o_ref.dtype)


def _round_up(x, m):
    return (x + m - 1) // m * m


def _vmem_capacity_bytes():
    try:
        info = pltpu.get_tpu_info()
        return int(getattr(info, "vmem_capacity_bytes", 64 << 20))
    except Exception:
        return 64 << 20  # conservative: v7x per-core VMEM


def _vmem_limit_bytes(tm, th, D, H, w_bytes, act_bytes, out_bytes, weight_buffers):
    weights = weight_buffers * 2 * D * H * w_bytes        # W1 + W2 residents
    biases = weight_buffers * (H + D) * 4                 # b1 + b2 (f32)
    io_tiles = 2 * tm * D * (act_bytes + out_bytes)       # x / out tiles, double-buffered
    acc = tm * D * 4                                      # f32 accumulator scratch
    interm = 4 * tm * max(th, D) * 4                      # h / g live intermediates + headroom
    est = int((weights + biases + io_tiles + acc + interm) * 1.25) + (4 << 20)
    cap = _vmem_capacity_bytes()
    # Never request more than ~80% of physical VMEM (v7x = 64 MiB; v5e/v6e = 128 MiB).
    return max(min(est, int(cap * 0.8)), 16 << 20)


def _pick_tm(M, tm):
    """Pick a row tile: >=2 tiles when possible (v7x megacore) and, if we can,
    one that divides M exactly so no pad/slice HBM passes are needed."""
    if M >= 16:
        tm = min(tm, _round_up(-(-M // 2), 8))   # at least 2 row tiles
    tm = max(8, min(tm, _round_up(M, 8)))
    if M % tm != 0:
        for cand in range(tm - tm % 8, 7, -8):
            if M % cand == 0 and cand * 4 >= tm:
                return cand
    return tm


def pack_ffn_params(w1, b1, w2, b2, *, th=512, mxu_dtype=jnp.bfloat16):
    """One-time packing of FFN parameters (hoisted out of the per-forward path).

    w1: (D, H); b1: (H,); w2: (H, D); b2: (D,).
    th       : hidden-dim chunk processed per (unrolled) inner step inside the kernel.
    mxu_dtype: MXU operand dtype (default bf16; pass jnp.float32 for exact math).
    """
    D, H = w1.shape
    th = min(th, H)
    assert H % th == 0, "hidden chunk th must divide hidden_dim"
    n_chunks = H // th
    mxu_dtype = jnp.dtype(mxu_dtype)

    # Hidden dim pre-chunked onto a leading axis -> cheap static leading-axis index
    # inside the kernel (no dynamic lane-dim slicing).
    w1r = jnp.asarray(w1, mxu_dtype).reshape(D, n_chunks, th).transpose(1, 0, 2)  # (n, D, th)
    w2r = jnp.asarray(w2, mxu_dtype).reshape(n_chunks, th, D)                     # (n, th, D)
    b1r = jnp.asarray(b1, jnp.float32).reshape(n_chunks, 1, th)
    b2r = jnp.asarray(b2, jnp.float32).reshape(1, D)
    return dict(w1=w1r, b1=b1r, w2=w2r, b2=b2r,
                D=D, H=H, th=th, n_chunks=n_chunks, mxu_dtype=mxu_dtype)


def ffn_forward(x, params, *, tm=256):
    """x: (B, S, D); params from pack_ffn_params().

    tm: row tile. Sweep 256 (v5e/v7x) .. 512 (v6e). Shrunk automatically so the row
        grid has >= 2 tiles (both v7x TensorCores busy) and, when possible, divides
        the row count exactly (no pad/slice passes).
    """
    B, S, D = x.shape
    assert D == params["D"], "feature dim mismatch with packed params"
    H, th, n_chunks = params["H"], params["th"], params["n_chunks"]
    mxu_dtype = params["mxu_dtype"]
    out_dtype = x.dtype

    M = B * S
    tm = _pick_tm(M, tm)
    M_pad = _round_up(M, tm)
    grid_m = M_pad // tm

    x2 = x.reshape(M, D).astype(mxu_dtype)
    if M_pad != M:
        # TODO(synk): mask the tail store in-kernel instead of padding for awkward M.
        x2 = jnp.pad(x2, ((0, M_pad - M), (0, 0)))

    act_bytes = mxu_dtype.itemsize
    out_bytes = jnp.dtype(out_dtype).itemsize
    w_bytes = act_bytes

    cost = pl.CostEstimate(
        flops=4 * M_pad * D * H,                 # two matmuls, 2*M*D*H each
        transcendentals=M_pad * H,               # tanh in the GELU
        bytes_accessed=(x2.size * act_bytes
                        + (params["w1"].size + params["w2"].size) * w_bytes
                        + (params["b1"].size + params["b2"].size) * 4
                        + M_pad * D * out_bytes),
    )

    kernel = functools.partial(ffn_kernel, mxu_dtype=mxu_dtype)
    scratch = [pltpu.VMEM((tm, D), jnp.float32)] if n_chunks > 1 else []

    def build(resident_weights):
        if resident_weights:
            # Whole-array VMEM residents: single copy, no dead double-buffer.
            w_specs = [pl.BlockSpec(memory_space=pltpu.MemorySpace.VMEM)] * 4
            weight_buffers = 1
        else:
            # Fallback: constant-index_map blocked specs (pipeline double-buffers them).
            w_specs = [
                pl.BlockSpec((n_chunks, D, th), lambda i: (0, 0, 0)),
                pl.BlockSpec((n_chunks, 1, th), lambda i: (0, 0, 0)),
                pl.BlockSpec((n_chunks, th, D), lambda i: (0, 0, 0)),
                pl.BlockSpec((1, D), lambda i: (0, 0)),
            ]
            weight_buffers = 2
        return pl.pallas_call(
            kernel,
            out_shape=jax.ShapeDtypeStruct((M_pad, D), out_dtype),
            grid_spec=pltpu.PrefetchScalarGridSpec(
                num_scalar_prefetch=0,
                grid=(grid_m,),
                in_specs=[pl.BlockSpec((tm, D), lambda i: (i, 0))] + w_specs,
                out_specs=pl.BlockSpec((tm, D), lambda i: (i, 0)),   # lane-dense output
                scratch_shapes=scratch,
            ),
            compiler_params=pltpu.CompilerParams(
                dimension_semantics=("parallel",),
                vmem_limit_bytes=_vmem_limit_bytes(tm, th, D, H, w_bytes, act_bytes,
                                                   out_bytes, weight_buffers),
            ),
            cost_estimate=cost,
        )

    args = (x2, params["w1"], params["b1"], params["w2"], params["b2"])
    try:
        out = build(True)(*args)
    except Exception:
        # Robust fallback: previously-verified blocked resident-weight specs.
        out = build(False)(*args)

    if M_pad != M:
        out = out[:M]
    return out.reshape(B, S, D)


def ffn_reference(x, w1, b1, w2, b2):
    h = jnp.dot(x, w1) + b1
    g = _gelu_tanh(h)
    return jnp.dot(g, w2) + b2


if __name__ == "__main__":
    # Small DistilBERT-like config: dim=32, hidden_dim=128, batch=2, seq=8 (float32).
    B, S, D, H = 2, 8, 32, 128
    key = jax.random.PRNGKey(0)
    kx, kw1, kb1, kw2, kb2 = jax.random.split(key, 5)

    x = jax.random.normal(kx, (B, S, D), dtype=jnp.float32)
    # Deterministic param init (roughly nn.Linear-like scale).
    w1 = jax.random.normal(kw1, (D, H), dtype=jnp.float32) * (1.0 / jnp.sqrt(D))
    b1 = jax.random.normal(kb1, (H,), dtype=jnp.float32) * 0.02
    w2 = jax.random.normal(kw2, (H, D), dtype=jnp.float32) * (1.0 / jnp.sqrt(H))
    b2 = jax.random.normal(kb2, (D,), dtype=jnp.float32) * 0.02

    ref = ffn_reference(x, w1, b1, w2, b2)

    # f32 MXU operand path (exact check vs reference).
    params_f32 = pack_ffn_params(w1, b1, w2, b2, mxu_dtype=jnp.float32)
    out_f32 = jax.block_until_ready(ffn_forward(x, params_f32))
    assert out_f32.shape == (B, S, D)
    assert jnp.allclose(out_f32, ref, atol=1e-4, rtol=1e-4), "f32 mismatch vs reference"

    # Default bf16 MXU operand path (f32 accumulation / bias / GELU).
    params_bf16 = pack_ffn_params(w1, b1, w2, b2)   # mxu_dtype defaults to bfloat16
    out_bf16 = jax.block_until_ready(ffn_forward(x, params_bf16))
    assert out_bf16.dtype == x.dtype
    assert jnp.allclose(out_bf16, ref, atol=5e-2, rtol=5e-2), "bf16 mismatch vs reference"

    print("KERNEL_OK")
</pallas_src>

<mosaic_0001>
module attributes {stable_mosaic.version = 11 : i64} {
  func.func @ffn_kernel(%arg0: i32, %arg1: memref<8x32xf32, #tpu.memory_space<vmem>>, %arg2: memref<1x32x128xf32, #tpu.memory_space<vmem>>, %arg3: memref<1x1x128xf32, #tpu.memory_space<vmem>>, %arg4: memref<1x128x32xf32, #tpu.memory_space<vmem>>, %arg5: memref<1x32xf32, #tpu.memory_space<vmem>>, %arg6: memref<8x32xf32, #tpu.memory_space<vmem>>) attributes {dimension_semantics = [#tpu.dimension_semantics<parallel>], iteration_bounds = array<i64: 2>, scalar_prefetch = 0 : i64, scratch_operands = 0 : i64, tpu.core_type = #tpu.core_type<tc>, window_params = [{transform_indices = @transform_0, window_bounds = array<i64: 8, 32>}, {pipeline_mode = #tpu.pipeline_mode<synchronous>, transform_indices = @transform_1, window_bounds = array<i64: 1, 32, 128>}, {pipeline_mode = #tpu.pipeline_mode<synchronous>, transform_indices = @transform_2, window_bounds = array<i64: 1, 1, 128>}, {pipeline_mode = #tpu.pipeline_mode<synchronous>, transform_indices = @transform_3, window_bounds = array<i64: 1, 128, 32>}, {pipeline_mode = #tpu.pipeline_mode<synchronous>, transform_indices = @transform_4, window_bounds = array<i64: 1, 32>}, {transform_indices = @transform_5, window_bounds = array<i64: 8, 32>}]} {
    %c0 = arith.constant 0 : index
    %c0_0 = arith.constant 0 : index
    %0 = vector.load %arg1[%c0, %c0_0] : memref<8x32xf32, #tpu.memory_space<vmem>>, vector<8x32xf32>
    %c0_1 = arith.constant 0 : index
    %c0_2 = arith.constant 0 : index
    %c0_3 = arith.constant 0 : index
    %1 = vector.load %arg2[%c0_1, %c0_2, %c0_3] : memref<1x32x128xf32, #tpu.memory_space<vmem>>, vector<1x32x128xf32>
    %2 = vector.shape_cast %1 : vector<1x32x128xf32> to vector<32x128xf32>
    %cst = arith.constant dense<0.000000e+00> : vector<8x128xf32>
    %3 = tpu.matmul %0, %2, %cst {dimension_numbers = #tpu.dot_dimension_numbers<[1], [0], [0], [1], [0, 0, 1, 1], [], []>} : vector<8x32xf32>, vector<32x128xf32>, vector<8x128xf32> -> vector<8x128xf32>
    %c0_4 = arith.constant 0 : index
    %c0_5 = arith.constant 0 : index
    %c0_6 = arith.constant 0 : index
    %4 = vector.load %arg3[%c0_4, %c0_5, %c0_6] : memref<1x1x128xf32, #tpu.memory_space<vmem>>, vector<1x1x128xf32>
    %5 = vector.shape_cast %4 : vector<1x1x128xf32> to vector<1x128xf32>
    %6 = vector.broadcast %5 : vector<1x128xf32> to vector<8x128xf32>
    %7 = arith.addf %3, %6 : vector<8x128xf32>
    %cst_7 = arith.constant 5.000000e-01 : f32
    %8 = vector.broadcast %cst_7 : f32 to vector<8x128xf32>
    %9 = arith.mulf %7, %8 : vector<8x128xf32>
    %cst_8 = arith.constant 0.797884583 : f32
    %10 = vector.broadcast %cst_8 : f32 to vector<8x128xf32>
    %11 = arith.mulf %10, %7 : vector<8x128xf32>
    %cst_9 = arith.constant 4.471500e-02 : f32
    %12 = vector.broadcast %cst_9 : f32 to vector<8x128xf32>
    %13 = arith.mulf %12, %7 : vector<8x128xf32>
    %14 = arith.mulf %13, %7 : vector<8x128xf32>
    %cst_10 = arith.constant 1.000000e+00 : f32
    %15 = vector.broadcast %cst_10 : f32 to vector<8x128xf32>
    %16 = arith.addf %15, %14 : vector<8x128xf32>
    %17 = arith.mulf %11, %16 : vector<8x128xf32>
    %18 = math.tanh %17 : vector<8x128xf32>
    %cst_11 = arith.constant 1.000000e+00 : f32
    %19 = vector.broadcast %cst_11 : f32 to vector<8x128xf32>
    %20 = arith.addf %19, %18 : vector<8x128xf32>
    %21 = arith.mulf %9, %20 : vector<8x128xf32>
    %c0_12 = arith.constant 0 : index
    %c0_13 = arith.constant 0 : index
    %c0_14 = arith.constant 0 : index
    %22 = vector.load %arg4[%c0_12, %c0_13, %c0_14] : memref<1x128x32xf32, #tpu.memory_space<vmem>>, vector<1x128x32xf32>
    %23 = vector.shape_cast %22 : vector<1x128x32xf32> to vector<128x32xf32>
    %cst_15 = arith.constant dense<0.000000e+00> : vector<8x32xf32>
    %24 = tpu.matmul %21, %23, %cst_15 {dimension_numbers = #tpu.dot_dimension_numbers<[1], [0], [0], [1], [0, 0, 1, 1], [], []>} : vector<8x128xf32>, vector<128x32xf32>, vector<8x32xf32> -> vector<8x32xf32>
    %c0_16 = arith.constant 0 : index
    %c0_17 = arith.constant 0 : index
    %25 = vector.load %arg5[%c0_16, %c0_17] : memref<1x32xf32, #tpu.memory_space<vmem>>, vector<1x32xf32>
    %26 = vector.broadcast %25 : vector<1x32xf32> to vector<8x32xf32>
    %27 = arith.addf %24, %26 : vector<8x32xf32>
    %c0_18 = arith.constant 0 : index
    %c0_19 = arith.constant 0 : index
    %28 = vector.load %arg6[%c0_18, %c0_19] : memref<8x32xf32, #tpu.memory_space<vmem>>, vector<8x32xf32>
    tpu.vector_store %arg6[%c0_18, %c0_19], %27 {strides = array<i32>} : memref<8x32xf32, #tpu.memory_space<vmem>>, vector<8x32xf32>,
    return
  }
  func.func @transform_0(%arg0: i32) -> (i32, i32) {
    %c0_i32 = arith.constant 0 : i32
    %c0_i32_0 = arith.constant 0 : i32
    return %arg0, %c0_i32 : i32, i32
  }
  func.func @transform_1(%arg0: i32) -> (i32, i32, i32) {
    %c0_i32 = arith.constant 0 : i32
    %c0_i32_0 = arith.constant 0 : i32
    %c0_i32_1 = arith.constant 0 : i32
    %c0_i32_2 = arith.constant 0 : i32
    return %c0_i32, %c0_i32_0, %c0_i32_1 : i32, i32, i32
  }
  func.func @transform_2(%arg0: i32) -> (i32, i32, i32) {
    %c0_i32 = arith.constant 0 : i32
    %c0_i32_0 = arith.constant 0 : i32
    %c0_i32_1 = arith.constant 0 : i32
    %c0_i32_2 = arith.constant 0 : i32
    return %c0_i32, %c0_i32_0, %c0_i32_1 : i32, i32, i32
  }
  func.func @transform_3(%arg0: i32) -> (i32, i32, i32) {
    %c0_i32 = arith.constant 0 : i32
    %c0_i32_0 = arith.constant 0 : i32
    %c0_i32_1 = arith.constant 0 : i32
    %c0_i32_2 = arith.constant 0 : i32
    return %c0_i32, %c0_i32_0, %c0_i32_1 : i32, i32, i32
  }
  func.func @transform_4(%arg0: i32) -> (i32, i32) {
    %c0_i32 = arith.constant 0 : i32
    %c0_i32_0 = arith.constant 0 : i32
    %c0_i32_1 = arith.constant 0 : i32
    return %c0_i32, %c0_i32_0 : i32, i32
  }
  func.func @transform_5(%arg0: i32) -> (i32, i32) {
    %c0_i32 = arith.constant 0 : i32
    %c0_i32_0 = arith.constant 0 : i32
    return %arg0, %c0_i32 : i32, i32
  }
}

module attributes {stable_mosaic.version = 11 : i64} {
  func.func @ffn_kernel(%arg0: i32, %arg1: memref<8x32xf32, #tpu.memory_space<vmem>>, %arg2: memref<1x32x128xf32, #tpu.memory_space<vmem>>, %arg3: memref<1x1x128xf32, #tpu.memory_space<vmem>>, %arg4: memref<1x128x32xf32, #tpu.memory_space<vmem>>, %arg5: memref<1x32xf32, #tpu.memory_space<vmem>>, %arg6: memref<8x32xf32, #tpu.memory_space<vmem>>) attributes {dimension_semantics = [#tpu.dimension_semantics<parallel>], iteration_bounds = array<i64: 2>, scalar_prefetch = 0 : i64, scratch_operands = 0 : i64, tpu.core_type = #tpu.core_type<tc>, window_params = [{transform_indices = @transform_0, window_bounds = array<i64: 8, 32>}, {pipeline_mode = #tpu.pipeline_mode<synchronous>, transform_indices = @transform_1, window_bounds = array<i64: 1, 32, 128>}, {pipeline_mode = #tpu.pipeline_mode<synchronous>, transform_indices = @transform_2, window_bounds = array<i64: 1, 1, 128>}, {pipeline_mode = #tpu.pipeline_mode<synchronous>, transform_indices = @transform_3, window_bounds = array<i64: 1, 128, 32>}, {pipeline_mode = #tpu.pipeline_mode<synchronous>, transform_indices = @transform_4, window_bounds = array<i64: 1, 32>}, {transform_indices = @transform_5, window_bounds = array<i64: 8, 32>}]} {
    %c0 = arith.constant 0 : index
    %c0_0 = arith.constant 0 : index
    %0 = vector.load %arg1[%c0, %c0_0] : memref<8x32xf32, #tpu.memory_space<vmem>>, vector<8x32xf32>
    %c0_1 = arith.constant 0 : index
    %c0_2 = arith.constant 0 : index
    %c0_3 = arith.constant 0 : index
    %1 = vector.load %arg2[%c0_1, %c0_2, %c0_3] : memref<1x32x128xf32, #tpu.memory_space<vmem>>, vector<1x32x128xf32>
    %2 = vector.shape_cast %1 : vector<1x32x128xf32> to vector<32x128xf32>
    %cst = arith.constant dense<0.000000e+00> : vector<8x128xf32>
    %3 = tpu.matmul %0, %2, %cst {dimension_numbers = #tpu.dot_dimension_numbers<[1], [0], [0], [1], [0, 0, 1, 1], [], []>} : vector<8x32xf32>, vector<32x128xf32>, vector<8x128xf32> -> vector<8x128xf32>
    %c0_4 = arith.constant 0 : index
    %c0_5 = arith.constant 0 : index
    %c0_6 = arith.constant 0 : index
    %4 = vector.load %arg3[%c0_4, %c0_5, %c0_6] : memref<1x1x128xf32, #tpu.memory_space<vmem>>, vector<1x1x128xf32>
    %5 = vector.shape_cast %4 : vector<1x1x128xf32> to vector<1x128xf32>
    %6 = vector.broadcast %5 : vector<1x128xf32> to vector<8x128xf32>
    %7 = arith.addf %3, %6 : vector<8x128xf32>
    %cst_7 = arith.constant 5.000000e-01 : f32
    %8 = vector.broadcast %cst_7 : f32 to vector<8x128xf32>
    %9 = arith.mulf %7, %8 : vector<8x128xf32>
    %cst_8 = arith.constant 0.797884583 : f32
    %10 = vector.broadcast %cst_8 : f32 to vector<8x128xf32>
    %11 = arith.mulf %10, %7 : vector<8x128xf32>
    %cst_9 = arith.constant 4.471500e-02 : f32
    %12 = vector.broadcast %cst_9 : f32 to vector<8x128xf32>
    %13 = arith.mulf %12, %7 : vector<8x128xf32>
    %14 = arith.mulf %13, %7 : vector<8x128xf32>
    %cst_10 = arith.constant 1.000000e+00 : f32
    %15 = vector.broadcast %cst_10 : f32 to vector<8x128xf32>
    %16 = arith.addf %15, %14 : vector<8x128xf32>
    %17 = arith.mulf %11, %16 : vector<8x128xf32>
    %18 = math.tanh %17 : vector<8x128xf32>
    %cst_11 = arith.constant 1.000000e+00 : f32
    %19 = vector.broadcast %cst_11 : f32 to vector<8x128xf32>
    %20 = arith.addf %19, %18 : vector<8x128xf32>
    %21 = arith.mulf %9, %20 : vector<8x128xf32>
    %c0_12 = arith.constant 0 : index
    %c0_13 = arith.constant 0 : index
    %c0_14 = arith.constant 0 : index
    %22 = vector.load %arg4[%c0_12, %c0_13, %c0_14] : memref<1x128x32xf32, #tpu.memory_space<vmem>>, vector<1x128x32xf32>
    %23 = vector.shape_cast %22 : vector<1x128x32xf32> to vector<128x32xf32>
    %cst_15 = arith.constant dense<0.000000e+00> : vector<8x32xf32>
    %24 = tpu.matmul %21, %23, %cst_15 {dimension_numbers = #tpu.dot_dimension_numbers<[1], [0], [0], [1], [0, 0, 1, 1], [], []>} : vector<8x128xf32>, vector<128x32xf32>, vector<8x32xf32> -> vector<8x32xf32>
    %c0_16 = arith.constant 0 : index
    %c0_17 = arith.constant 0 : index
    %25 = vector.load %arg5[%c0_16, %c0_17] : memref<1x32xf32, #tpu.memory_space<vmem>>, vector<1x32xf32>
    %26 = vector.broadcast %25 : vector<1x32xf32> to vector<8x32xf32>
    %27 = arith.addf %24, %26 : vector<8x32xf32>
    %c0_18 = arith.constant 0 : index
    %c0_19 = arith.constant 0 : index
    %28 = vector.load %arg6[%c0_18, %c0_19] : memref<8x32xf32, #tpu.memory_space<vmem>>, vector<8x32xf32>
    tpu.vector_store %arg6[%c0_18, %c0_19], %27 {strides = array<i32>} : memref<8x32xf32, #tpu.memory_space<vmem>>, vector<8x32xf32>,
    return
  }
  func.func @transform_0(%arg0: i32) -> (i32, i32) {
    %c0_i32 = arith.constant 0 : i32
    %c0_i32_0 = arith.constant 0 : i32
    return %arg0, %c0_i32 : i32, i32
  }
  func.func @transform_1(%arg0: i32) -> (i32, i32, i32) {
    %c0_i32 = arith.constant 0 : i32
    %c0_i32_0 = arith.constant 0 : i32
    %c0_i32_1 = arith.constant 0 : i32
    %c0_i32_2 = arith.constant 0 : i32
    return %c0_i32, %c0_i32_0, %c0_i32_1 : i32, i32, i32
  }
  func.func @transform_2(%arg0: i32) -> (i32, i32, i32) {
    %c0_i32 = arith.constant 0 : i32
    %c0_i32_0 = arith.constant 0 : i32
    %c0_i32_1 = arith.constant 0 : i32
    %c0_i32_2 = arith.constant 0 : i32
    return %c0_i32, %c0_i32_0, %c0_i32_1 : i32, i32, i32
  }
  func.func @transform_3(%arg0: i32) -> (i32, i32, i32) {
    %c0_i32 = arith.constant 0 : i32
    %c0_i32_0 = arith.constant 0 : i32
    %c0_i32_1 = arith.constant 0 : i32
    %c0_i32_2 = arith.constant 0 : i32
    return %c0_i32, %c0_i32_0, %c0_i32_1 : i32, i32, i32
  }
  func.func @transform_4(%arg0: i32) -> (i32, i32) {
    %c0_i32 = arith.constant 0 : i32
    %c0_i32_0 = arith.constant 0 : i32
    %c0_i32_1 = arith.constant 0 : i32
    return %c0_i32, %c0_i32_0 : i32, i32
  }
  func.func @transform_5(%arg0: i32) -> (i32, i32) {
    %c0_i32 = arith.constant 0 : i32
    %c0_i32_0 = arith.constant 0 : i32
    return %arg0, %c0_i32 : i32, i32
  }
}

</mosaic_0001>

<bundles_post_ra>
// kernel: tpu_custom_call.1
= control target key start
LH: loop header
LB: loop body
LE: loop exit
PB: predicated region body
PF: predicated region fallthrough
CT: control target
= control target key end

     0   :  { %10 = vsyncpa [#allocation3], 0  ;;  %s884_s0 = inlined_call_operand.vmem [shape: f32[16,32], index: 0, kind: input, shape index: {}]   ;;  %s885_s1 = inlined_call_operand.vmem [shape: f32[1,32,128], index: 1, kind: input, shape index: {}]   ;;  %s886_s2 = inlined_call_operand.vmem [shape: f32[1,1,128], index: 2, kind: input, shape index: {}]   ;;  %s887_s3 = inlined_call_operand.vmem [shape: f32[1,128,32], index: 3, kind: input, shape index: {}]   ;;  %s888_s4 = inlined_call_operand.vmem [shape: f32[1,32], index: 4, kind: input, shape index: {}]   ;;  %s889_s5 = inlined_call_operand.hbm [shape: f32[16,32], index: 5, kind: output, shape index: {}]  }
   0x1   :  { %12 = vsyncpa [#allocation3 + $0x1], 0  ;;  %s701_s18 = smov 0   ;;  %s703_s19 = smov 0  }
   0x2   :  { %s705_s20 = smov 0   ;;  %s707_s21 = smov 0  }
   0x3 LB: > { %s722_s22 = sadd.s32 4294967295, %s666_s21   ;;  %s482_s23 = sadd.s32 4294967294, %s666_s21   ;;  %s666_s21 = sphi %s707_s21, %s895_s21   ;;  %s662_s20 = sphi %s705_s20, %s894_s20   ;;  %s658_s19 = sphi %s703_s19, %s893_s19   ;;  %s654_s18 = sphi %s701_s18, %s892_s18  }
   0x4   : > { %s726_s24 = sadd.s32 1, %s666_s21   ;;  %s135_s25 = sadd.s32 1, %s662_s20 }
   0x5   : > { %s132_s26 = ssub.s32 %s666_s21, %s726_s24  ;;  %p145_p0 = scmp.ne.s32.totalorder %s662_s20, %s658_s19 }
   0x6   : > { %p133_p1 = scmp.eq.s32.totalorder %s132_s26, 0  ;;  %p146_p2 = scmp.eq.s32.totalorder %s722_s22, 1 }
   0x7   : > { %p151_p3 = scmp.ne.s32.totalorder %s658_s19, %s654_s18  ;;  %p152_p4 = scmp.eq.s32.totalorder %s482_s23, 1 }
   0x8   : > { %s737_s27 = scalar_select %p133_p1, %s662_s20, %s135_s25  }
   0x9   : > { %p739_p5 = por %p146_p2, %p145_p0  ;;  %p743_p6 = por %p152_p4, %p151_p3 }
   0xa   : > { %p485_p7 = scmp.ge.s32.totalorder %s666_s21, 1  ;;  %p189_p8 = scmp.lt.s32.totalorder %s666_s21, 3 }
   0xc   : > { %p190_p9 = pnand %p485_p7, %p189_p8 }
   0xd   : > { %p216_p10 = scmp.lt.s32.totalorder (!%p190_p9), %s722_s22, 1  ;;  %s213_s26 = sand.u32 (!%p190_p9), 1, %s658_s19  }
   0xe   : > { %193 = sbr.rel (%p190_p9) target bundleno = 457 (0x1c9), region = 40  ;;  %s486_s30 = sshll.u32 (!%p190_p9), %s213_s26, 3 }
   0xf   : > { %s492_s8 = sshll.u32 (!%p190_p9), %s722_s22, 7  ;;  %s215_s9 = scalar_lea.vmem (!%p190_p9), [#allocation2], %s486_s30 }
  0x10   : > { %s423_s10 = sshll.u32 (!%p190_p9), %s215_s9, 4  ;;  %s848_s13 = scalar_lea.hbm (!%p190_p9), %s889_s5, %s492_s8  ;;  %s424_s10 = int_to_ptr.vmem [resolvable:$true] %s423_s10 }
  0x11   : > { %s606_s15 = scalar_lea.vmem (!%p190_p9), %s424_s10, 128 }
  0x12   : > { %p607_p11 = scmp.ne.s32.totalorder (!%p190_p9), %s424_s10, %s606_s15 }
  0x13   : > { %v224_v0 = vld [vmem:[%s885_s1 + $0x18] sm:$0xff]  ;;  %v668_v1 = vmov 0.0   ;;  %v223_v2 = vld [vmem:[%s885_s1 + $0x10] sm:$0xff]  ;;  %vm669_vm0 = vmmov 0   ;;  %s217_s11 = scalar_select %p216_p10, %s722_s22, 1  ;;  %v222_v4 = vld [vmem:[%s885_s1 + $0x8] sm:$0xff] }
  0x14   : > { %517 = vmatprep.subr.mxu0 %v668_v1  ;;  %525 = vmatprep.mubr.msk.f32.mxu0 %vm669_vm0, %v668_v1  ;;  %v330_v3 = vld [vmem:[%s887_s3 + $0x78] sm:$0xff]  ;;  %v221_v5 = vld [vmem:[%s885_s1] sm:$0xff]  ;;  %vm232_vm1 = vcmask 261120   ;;  %v329_v7 = vld [vmem:[%s887_s3 + $0x70] sm:$0xff]  ;;  %p608_p12 = pnand %p607_p11, %p739_p5  ;;  %s670_s22 = smov [#allocation2]  }
  0x15   : > { %518 = vmatpush3.msra.mxu0 %v224_v0  ;;  %528 = vmatprep.subr.mxu1 %v668_v1  ;;  %s487_s14 = sshll.u32 %s217_s11, 3  ;;  %v328_v8 = vld [vmem:[%s887_s3 + $0x68] sm:$0xff]  ;;  %v327_v9 = vld [vmem:[%s887_s3 + $0x60] sm:$0xff]  ;;  %v326_v10 = vld [vmem:[%s887_s3 + $0x58] sm:$0xff]  ;;  %s610_s16 = sshll.u32 %s670_s22, 4  ;;  %s611_s16 = int_to_ptr.vmem [resolvable:$false] %s610_s16 }
  0x16   : > { %519 = vmatprep.subr.mxu0 %v668_v1  ;;  %529 = vmatpush3.msra.mxu1 %v330_v3  ;;  %s219_s25 = scalar_lea.vmem %s884_s0, %s487_s14  ;;  %v325_v11 = vld [vmem:[%s887_s3 + $0x50] sm:$0xff]  ;;  %v324_v12 = vld [vmem:[%s887_s3 + $0x48] sm:$0xff]  ;;  %v323_v13 = vld [vmem:[%s887_s3 + $0x40] sm:$0xff]  ;;  %s410_s14 = scalar_lea.sflag [#allocation3], %s213_s26 }
  0x17   : > { %520 = vmatpush3.msra.mxu0 %v223_v2  ;;  %530 = vmatprep.subr.mxu1 %v668_v1  ;;  %v220_v6 = vld [vmem:[%s219_s25] sm:$0xff]  ;;  %v322_v14 = vld [vmem:[%s887_s3 + $0x38] sm:$0xff]  ;;  %v321_v15 = vld [vmem:[%s887_s3 + $0x30] sm:$0xff]  ;;  %p609_p13 = pneg %p608_p12  ;;  %s612_s17 = scalar_lea.vmem %s611_s16, 256 }
  0x18   : > { %521 = vmatprep.subr.mxu0 %v668_v1  ;;  %560 = vmatprep.mubr.msk.f32.mxu1 %vm669_vm0, %v668_v1  ;;  %v320_v16 = vld [vmem:[%s887_s3 + $0x28] sm:$0xff]  ;;  %v319_v17 = vld [vmem:[%s887_s3 + $0x20] sm:$0xff]  ;;  %v318_v18 = vld [vmem:[%s887_s3 + $0x18] sm:$0xff]  ;;  %p613_p0 = scmp.lt.s32.totalorder %s424_s10, %s611_s16  ;;  %p614_p1 = scmp.lt.s32.totalorder %s612_s17, %s606_s15 }
  0x19   : > { %522 = vmatpush3.msra.mxu0 %v222_v4  ;;  %531 = vmatpush3.msra.mxu1 %v329_v7  ;;  %v317_v19 = vld [vmem:[%s887_s3 + $0x10] sm:$0xff]  ;;  %v316_v20 = vld [vmem:[%s887_s3 + $0x8] sm:$0xff]  ;;  %v315_v21 = vld [vmem:[%s887_s3] sm:$0xff] }
  0x1a   : > { %523 = vmatprep.subr.mxu0 %v668_v1  ;;  %532 = vmatprep.subr.mxu1 %v668_v1  ;;  %v488_v22 = vld [vmem:[%s886_s2] ss:$0 sm:$0xff]  ;;  %p615_p2 = por %p614_p1, %p613_p0 }
  0x1b   : > { %524 = vmatpush3.msra.mxu0 %v221_v5  ;;  %533 = vmatpush3.msra.mxu1 %v328_v8  ;;  %v490_v35 = vld [vmem:[%s888_s4] ss:$0 sm:$0xff] }
  0x1c   : > { %526 = vmatmul.mubr.msk.f32.vlgmr.msra.gmra.mxu0 %vm232_vm1, %v220_v6  ;;  %534 = vmatprep.subr.mxu1 %v668_v1  ;;  %p616_p3 = pnand %p615_p2, %p609_p13 }
  0x1d   : > { %535 = vmatpush3.msra.mxu1 %v327_v9 }
  0x1e   : > { %536 = vmatprep.subr.mxu1 %v668_v1 }
  0x1f   : > { %537 = vmatpush3.msra.mxu1 %v326_v10 }
  0x20   : > { %538 = vmatprep.subr.mxu1 %v668_v1 }
  0x21   : > { %539 = vmatpush3.msra.mxu1 %v325_v11 }
  0x22   : > { %540 = vmatprep.subr.mxu1 %v668_v1 }
  0x23   : > { %541 = vmatpush3.msra.mxu1 %v324_v12 }
  0x24   : > { %542 = vmatprep.subr.mxu1 %v668_v1 }
  0x25   : > { %543 = vmatpush3.msra.mxu1 %v323_v13 }
  0x26   : > { %544 = vmatprep.subr.mxu1 %v668_v1 }
  0x27   : > { %545 = vmatpush3.msra.mxu1 %v322_v14 }
  0x28   : > { %546 = vmatprep.subr.mxu1 %v668_v1 }
  0x29   : > { %547 = vmatpush3.msra.mxu1 %v321_v15 }
  0x2a   : > { %548 = vmatprep.subr.mxu1 %v668_v1 }
  0x2b   : > { %549 = vmatpush3.msra.mxu1 %v320_v16 }
  0x2c   : > { %550 = vmatprep.subr.mxu1 %v668_v1 }
  0x2d   : > { %551 = vmatpush3.msra.mxu1 %v319_v17 }
  0x2e   : > { %552 = vmatprep.subr.mxu1 %v668_v1 }
  0x2f   : > { %553 = vmatpush3.msra.mxu1 %v318_v18 }
  0x30   : > { %554 = vmatprep.subr.mxu1 %v668_v1 }
  0x31   : > { %555 = vmatpush3.msra.mxu1 %v317_v19 }
  0x32   : > { %556 = vmatprep.subr.mxu1 %v668_v1 }
  0x33   : > { %557 = vmatpush3.msra.mxu1 %v316_v20 }
  0x34   : > { %558 = vmatprep.subr.mxu1 %v668_v1 }
  0x35   : > { %559 = vmatpush3.msra.mxu1 %v315_v21 }
  0xdc   : > { %v302_v23 = vpop.f32.mrf.mxu0 }
  0xdd   : > { %v303_v24 = vadd.f32 %v488_v22, %v302_v23 }
  0xde   : > { %v527_v25 = vpop.f32.mrf.mxu0 }
  0xdf   : > { %v308_v26 = vmul.f32 0.044715, %v303_v24  ;;  %v307_v28 = vmul.f32 0.7978846, %v303_v24  ;;  %v306_v32 = vmul.f32 0.5, %v303_v24 }
  0xe1   : > { %v309_v27 = vmul.f32 %v308_v26, %v303_v24 }
  0xe3   : > { %v310_v29 = vadd.f32 1.0, %v309_v27 }
  0xe5   : > { %v311_v30 = vmul.f32 %v310_v29, %v307_v28 }
  0xe7   : > { %604 = vtanh.f32 %v311_v30 }
  0xf4   : > { %v605_v31 = vpop.eup %604 }
  0xf5   : > { %v313_v33 = vadd.f32 1.0, %v605_v31 }
  0xf7   : > { %v314_v34 = vmul.f32 %v313_v33, %v306_v32 }
  0xf9   : > { %561 = vmatmul.mubr.f32.vlgmr.msra.gmra.mxu1 %v314_v34 }
 0x1b9   : > { %v404_v36 = vpop.f32.mrf.mxu1 }
 0x1ba   : > { %v405_v37 = vadd.f32 %v490_v35, %v404_v36 }
 0x1bb   : > { %v562_v38 = vpop.f32.mrf.mxu1 }
 0x1bc   : > { %408 = vst.msk [vmem:[%s215_s9] sm:$0xff] %vm232_vm1, %v405_v37 }
 0x1bd   : > { %619 = shalt.err (!%p616_p3)
}
 0x1be   : > { %s620_s23 = scalar_lea.hbm %s848_s13, 128  ;;  %s624_s30 = scalar_lea.hbm %s889_s5, 256 }
 0x1bf   : > { %p621_p4 = scmp.ne.s32.totalorder %s848_s13, %s620_s23  ;;  %p625_p9 = scmp.lt.s32.totalorder %s848_s13, %s889_s5 }
 0x1c0   : > { %p626_p10 = scmp.lt.s32.totalorder %s624_s30, %s620_s23 }
 0x1c1   : > { %p622_p7 = pnand %p621_p4, %p739_p5 }
 0x1c2   : > { %p627_p11 = por %p626_p10, %p625_p9 }
 0x1c3   : > { %p623_p8 = pneg %p622_p7 }
 0x1c5   : > { %p628_p12 = pnand %p627_p11, %p623_p8 }
 0x1c7   : > { %631 = shalt.err (!%p628_p12)
}
 0x1c8   : > { %563 = dma.vmem_to_hbm [thread:$0]  (%p739_p5), %s424_s10, 128, %s848_s13, %s410_s14  }
 0x1c9 PF: > { %p569_p13 = scmp.ge.s32.totalorder %s666_s21, 2  ;;  %s435_s8 = sand.u32 1, %s654_s18  }
 0x1ca   : > { %s436_s9 = scalar_lea.sflag [#allocation3], %s435_s8 }
 0x1cb   : > { %p566_p0 = pnand %p569_p13, %p743_p6 }
 0x1cd   : > { %p567_p1 = pneg %p566_p0 }
 0x1cf   : > { %649 = dma.done.wait (%p567_p1), %s436_s9, 128  }
 0x1d0   : > { %651 = vsyncadd (%p567_p1), %s436_s9, 4294967168  ;;  %p15_p2 = scmp.ge.s32.totalorder %s726_s24, 4   ;;  %s892_s18 = smov %s658_s19 }
 0x1d1   : > { %s893_s19 = smov %s662_s20  ;;  %s894_s20 = smov %s737_s27 }
 0x1d2   : > { %s895_s21 = smov %s726_s24  ;;  %17 = sbr.rel (!%p15_p2) target bundleno = 3 (0x3), region = 75 }
 0x1d7   :  { %441 = vsyncpa [#allocation3], 1 }
 0x1d8   :  { %443 = vsyncpa [#allocation3 + $0x1], 1 }

// kernel: tpu_custom_call.1
= control target key start
LH: loop header
LB: loop body
LE: loop exit
PB: predicated region body
PF: predicated region fallthrough
CT: control target
= control target key end

     0   :  { %10 = vsyncpa [#allocation3], 0  ;;  %s884_s0 = inlined_call_operand.vmem [shape: f32[16,32], index: 0, kind: input, shape index: {}]   ;;  %s885_s1 = inlined_call_operand.vmem [shape: f32[1,32,128], index: 1, kind: input, shape index: {}]   ;;  %s886_s2 = inlined_call_operand.vmem [shape: f32[1,1,128], index: 2, kind: input, shape index: {}]   ;;  %s887_s3 = inlined_call_operand.vmem [shape: f32[1,128,32], index: 3, kind: input, shape index: {}]   ;;  %s888_s4 = inlined_call_operand.vmem [shape: f32[1,32], index: 4, kind: input, shape index: {}]   ;;  %s889_s5 = inlined_call_operand.hbm [shape: f32[16,32], index: 5, kind: output, shape index: {}]  }
   0x1   :  { %12 = vsyncpa [#allocation3 + $0x1], 0  ;;  %s701_s18 = smov 0   ;;  %s703_s19 = smov 0  }
   0x2   :  { %s705_s20 = smov 0   ;;  %s707_s21 = smov 0  }
   0x3 LB: > { %s722_s22 = sadd.s32 4294967295, %s666_s21   ;;  %s482_s23 = sadd.s32 4294967294, %s666_s21   ;;  %s666_s21 = sphi %s707_s21, %s895_s21   ;;  %s662_s20 = sphi %s705_s20, %s894_s20   ;;  %s658_s19 = sphi %s703_s19, %s893_s19   ;;  %s654_s18 = sphi %s701_s18, %s892_s18  }
   0x4   : > { %s726_s24 = sadd.s32 1, %s666_s21   ;;  %s135_s25 = sadd.s32 1, %s662_s20 }
   0x5   : > { %s132_s26 = ssub.s32 %s666_s21, %s726_s24  ;;  %p145_p0 = scmp.ne.s32.totalorder %s662_s20, %s658_s19 }
   0x6   : > { %p133_p1 = scmp.eq.s32.totalorder %s132_s26, 0  ;;  %p146_p2 = scmp.eq.s32.totalorder %s722_s22, 1 }
   0x7   : > { %p151_p3 = scmp.ne.s32.totalorder %s658_s19, %s654_s18  ;;  %p152_p4 = scmp.eq.s32.totalorder %s482_s23, 1 }
   0x8   : > { %s737_s27 = scalar_select %p133_p1, %s662_s20, %s135_s25  }
   0x9   : > { %p739_p5 = por %p146_p2, %p145_p0  ;;  %p743_p6 = por %p152_p4, %p151_p3 }
   0xa   : > { %p485_p7 = scmp.ge.s32.totalorder %s666_s21, 1  ;;  %p189_p8 = scmp.lt.s32.totalorder %s666_s21, 3 }
   0xc   : > { %p190_p9 = pnand %p485_p7, %p189_p8 }
   0xd   : > { %p216_p10 = scmp.lt.s32.totalorder (!%p190_p9), %s722_s22, 1  ;;  %s213_s26 = sand.u32 (!%p190_p9), 1, %s658_s19  }
   0xe   : > { %193 = sbr.rel (%p190_p9) target bundleno = 457 (0x1c9), region = 40  ;;  %s486_s30 = sshll.u32 (!%p190_p9), %s213_s26, 3 }
   0xf   : > { %s492_s8 = sshll.u32 (!%p190_p9), %s722_s22, 7  ;;  %s215_s9 = scalar_lea.vmem (!%p190_p9), [#allocation2], %s486_s30 }
  0x10   : > { %s423_s10 = sshll.u32 (!%p190_p9), %s215_s9, 4  ;;  %s848_s13 = scalar_lea.hbm (!%p190_p9), %s889_s5, %s492_s8  ;;  %s424_s10 = int_to_ptr.vmem [resolvable:$true] %s423_s10 }
  0x11   : > { %s606_s15 = scalar_lea.vmem (!%p190_p9), %s424_s10, 128 }
  0x12   : > { %p607_p11 = scmp.ne.s32.totalorder (!%p190_p9), %s424_s10, %s606_s15 }
  0x13   : > { %v224_v0 = vld [vmem:[%s885_s1 + $0x18] sm:$0xff]  ;;  %v668_v1 = vmov 0.0   ;;  %v223_v2 = vld [vmem:[%s885_s1 + $0x10] sm:$0xff]  ;;  %vm669_vm0 = vmmov 0   ;;  %s217_s11 = scalar_select %p216_p10, %s722_s22, 1  ;;  %v222_v4 = vld [vmem:[%s885_s1 + $0x8] sm:$0xff] }
  0x14   : > { %517 = vmatprep.subr.mxu0 %v668_v1  ;;  %525 = vmatprep.mubr.msk.f32.mxu0 %vm669_vm0, %v668_v1  ;;  %v330_v3 = vld [vmem:[%s887_s3 + $0x78] sm:$0xff]  ;;  %v221_v5 = vld [vmem:[%s885_s1] sm:$0xff]  ;;  %vm232_vm1 = vcmask 261120   ;;  %v329_v7 = vld [vmem:[%s887_s3 + $0x70] sm:$0xff]  ;;  %p608_p12 = pnand %p607_p11, %p739_p5  ;;  %s670_s22 = smov [#allocation2]  }
  0x15   : > { %518 = vmatpush3.msra.mxu0 %v224_v0  ;;  %528 = vmatprep.subr.mxu1 %v668_v1  ;;  %s487_s14 = sshll.u32 %s217_s11, 3  ;;  %v328_v8 = vld [vmem:[%s887_s3 + $0x68] sm:$0xff]  ;;  %v327_v9 = vld [vmem:[%s887_s3 + $0x60] sm:$0xff]  ;;  %v326_v10 = vld [vmem:[%s887_s3 + $0x58] sm:$0xff]  ;;  %s610_s16 = sshll.u32 %s670_s22, 4  ;;  %s611_s16 = int_to_ptr.vmem [resolvable:$false] %s610_s16 }
  0x16   : > { %519 = vmatprep.subr.mxu0 %v668_v1  ;;  %529 = vmatpush3.msra.mxu1 %v330_v3  ;;  %s219_s25 = scalar_lea.vmem %s884_s0, %s487_s14  ;;  %v325_v11 = vld [vmem:[%s887_s3 + $0x50] sm:$0xff]  ;;  %v324_v12 = vld [vmem:[%s887_s3 + $0x48] sm:$0xff]  ;;  %v323_v13 = vld [vmem:[%s887_s3 + $0x40] sm:$0xff]  ;;  %s410_s14 = scalar_lea.sflag [#allocation3], %s213_s26 }
  0x17   : > { %520 = vmatpush3.msra.mxu0 %v223_v2  ;;  %530 = vmatprep.subr.mxu1 %v668_v1  ;;  %v220_v6 = vld [vmem:[%s219_s25] sm:$0xff]  ;;  %v322_v14 = vld [vmem:[%s887_s3 + $0x38] sm:$0xff]  ;;  %v321_v15 = vld [vmem:[%s887_s3 + $0x30] sm:$0xff]  ;;  %p609_p13 = pneg %p608_p12  ;;  %s612_s17 = scalar_lea.vmem %s611_s16, 256 }
  0x18   : > { %521 = vmatprep.subr.mxu0 %v668_v1  ;;  %560 = vmatprep.mubr.msk.f32.mxu1 %vm669_vm0, %v668_v1  ;;  %v320_v16 = vld [vmem:[%s887_s3 + $0x28] sm:$0xff]  ;;  %v319_v17 = vld [vmem:[%s887_s3 + $0x20] sm:$0xff]  ;;  %v318_v18 = vld [vmem:[%s887_s3 + $0x18] sm:$0xff]  ;;  %p613_p0 = scmp.lt.s32.totalorder %s424_s10, %s611_s16  ;;  %p614_p1 = scmp.lt.s32.totalorder %s612_s17, %s606_s15 }
  0x19   : > { %522 = vmatpush3.msra.mxu0 %v222_v4  ;;  %531 = vmatpush3.msra.mxu1 %v329_v7  ;;  %v317_v19 = vld [vmem:[%s887_s3 + $0x10] sm:$0xff]  ;;  %v316_v20 = vld [vmem:[%s887_s3 + $0x8] sm:$0xff]  ;;  %v315_v21 = vld [vmem:[%s887_s3] sm:$0xff] }
  0x1a   : > { %523 = vmatprep.subr.mxu0 %v668_v1  ;;  %532 = vmatprep.subr.mxu1 %v668_v1  ;;  %v488_v22 = vld [vmem:[%s886_s2] ss:$0 sm:$0xff]  ;;  %p615_p2 = por %p614_p1, %p613_p0 }
  0x1b   : > { %524 = vmatpush3.msra.mxu0 %v221_v5  ;;  %533 = vmatpush3.msra.mxu1 %v328_v8  ;;  %v490_v35 = vld [vmem:[%s888_s4] ss:$0 sm:$0xff] }
  0x1c   : > { %526 = vmatmul.mubr.msk.f32.vlgmr.msra.gmra.mxu0 %vm232_vm1, %v220_v6  ;;  %534 = vmatprep.subr.mxu1 %v668_v1  ;;  %p616_p3 = pnand %p615_p2, %p609_p13 }
  0x1d   : > { %535 = vmatpush3.msra.mxu1 %v327_v9 }
  0x1e   : > { %536 = vmatprep.subr.mxu1 %v668_v1 }
  0x1f   : > { %537 = vmatpush3.msra.mxu1 %v326_v10 }
  0x20   : > { %538 = vmatprep.subr.mxu1 %v668_v1 }
  0x21   : > { %539 = vmatpush3.msra.mxu1 %v325_v11 }
  0x22   : > { %540 = vmatprep.subr.mxu1 %v668_v1 }
  0x23   : > { %541 = vmatpush3.msra.mxu1 %v324_v12 }
  0x24   : > { %542 = vmatprep.subr.mxu1 %v668_v1 }
  0x25   : > { %543 = vmatpush3.msra.mxu1 %v323_v13 }
  0x26   : > { %544 = vmatprep.subr.mxu1 %v668_v1 }
  0x27   : > { %545 = vmatpush3.msra.mxu1 %v322_v14 }
  0x28   : > { %546 = vmatprep.subr.mxu1 %v668_v1 }
  0x29   : > { %547 = vmatpush3.msra.mxu1 %v321_v15 }
  0x2a   : > { %548 = vmatprep.subr.mxu1 %v668_v1 }
  0x2b   : > { %549 = vmatpush3.msra.mxu1 %v320_v16 }
  0x2c   : > { %550 = vmatprep.subr.mxu1 %v668_v1 }
  0x2d   : > { %551 = vmatpush3.msra.mxu1 %v319_v17 }
  0x2e   : > { %552 = vmatprep.subr.mxu1 %v668_v1 }
  0x2f   : > { %553 = vmatpush3.msra.mxu1 %v318_v18 }
  0x30   : > { %554 = vmatprep.subr.mxu1 %v668_v1 }
  0x31   : > { %555 = vmatpush3.msra.mxu1 %v317_v19 }
  0x32   : > { %556 = vmatprep.subr.mxu1 %v668_v1 }
  0x33   : > { %557 = vmatpush3.msra.mxu1 %v316_v20 }
  0x34   : > { %558 = vmatprep.subr.mxu1 %v668_v1 }
  0x35   : > { %559 = vmatpush3.msra.mxu1 %v315_v21 }
  0xdc   : > { %v302_v23 = vpop.f32.mrf.mxu0 }
  0xdd   : > { %v303_v24 = vadd.f32 %v488_v22, %v302_v23 }
  0xde   : > { %v527_v25 = vpop.f32.mrf.mxu0 }
  0xdf   : > { %v308_v26 = vmul.f32 0.044715, %v303_v24  ;;  %v307_v28 = vmul.f32 0.7978846, %v303_v24  ;;  %v306_v32 = vmul.f32 0.5, %v303_v24 }
  0xe1   : > { %v309_v27 = vmul.f32 %v308_v26, %v303_v24 }
  0xe3   : > { %v310_v29 = vadd.f32 1.0, %v309_v27 }
  0xe5   : > { %v311_v30 = vmul.f32 %v310_v29, %v307_v28 }
  0xe7   : > { %604 = vtanh.f32 %v311_v30 }
  0xf4   : > { %v605_v31 = vpop.eup %604 }
  0xf5   : > { %v313_v33 = vadd.f32 1.0, %v605_v31 }
  0xf7   : > { %v314_v34 = vmul.f32 %v313_v33, %v306_v32 }
  0xf9   : > { %561 = vmatmul.mubr.f32.vlgmr.msra.gmra.mxu1 %v314_v34 }
 0x1b9   : > { %v404_v36 = vpop.f32.mrf.mxu1 }
 0x1ba   : > { %v405_v37 = vadd.f32 %v490_v35, %v404_v36 }
 0x1bb   : > { %v562_v38 = vpop.f32.mrf.mxu1 }
 0x1bc   : > { %408 = vst.msk [vmem:[%s215_s9] sm:$0xff] %vm232_vm1, %v405_v37 }
 0x1bd   : > { %619 = shalt.err (!%p616_p3)
}
 0x1be   : > { %s620_s23 = scalar_lea.hbm %s848_s13, 128  ;;  %s624_s30 = scalar_lea.hbm %s889_s5, 256 }
 0x1bf   : > { %p621_p4 = scmp.ne.s32.totalorder %s848_s13, %s620_s23  ;;  %p625_p9 = scmp.lt.s32.totalorder %s848_s13, %s889_s5 }
 0x1c0   : > { %p626_p10 = scmp.lt.s32.totalorder %s624_s30, %s620_s23 }
 0x1c1   : > { %p622_p7 = pnand %p621_p4, %p739_p5 }
 0x1c2   : > { %p627_p11 = por %p626_p10, %p625_p9 }
 0x1c3   : > { %p623_p8 = pneg %p622_p7 }
 0x1c5   : > { %p628_p12 = pnand %p627_p11, %p623_p8 }
 0x1c7   : > { %631 = shalt.err (!%p628_p12)
}
 0x1c8   : > { %563 = dma.vmem_to_hbm [thread:$0]  (%p739_p5), %s424_s10, 128, %s848_s13, %s410_s14  }
 0x1c9 PF: > { %p569_p13 = scmp.ge.s32.totalorder %s666_s21, 2  ;;  %s435_s8 = sand.u32 1, %s654_s18  }
 0x1ca   : > { %s436_s9 = scalar_lea.sflag [#allocation3], %s435_s8 }
 0x1cb   : > { %p566_p0 = pnand %p569_p13, %p743_p6 }
 0x1cd   : > { %p567_p1 = pneg %p566_p0 }
 0x1cf   : > { %649 = dma.done.wait (%p567_p1), %s436_s9, 128  }
 0x1d0   : > { %651 = vsyncadd (%p567_p1), %s436_s9, 4294967168  ;;  %p15_p2 = scmp.ge.s32.totalorder %s726_s24, 4   ;;  %s892_s18 = smov %s658_s19 }
 0x1d1   : > { %s893_s19 = smov %s662_s20  ;;  %s894_s20 = smov %s737_s27 }
 0x1d2   : > { %s895_s21 = smov %s726_s24  ;;  %17 = sbr.rel (!%p15_p2) target bundleno = 3 (0x3), region = 75 }
 0x1d7   :  { %441 = vsyncpa [#allocation3], 1 }
 0x1d8   :  { %443 = vsyncpa [#allocation3 + $0x1], 1 }

</bundles_post_ra>
